<compile_context>
chip_gen: v7x
topology: tpu7x:2x2x1
jax: 0.10.0
libtpu: 0.0.40
codegen_flags: <defaults>
</compile_context>

<pallas_src>
import functools

import jax
import jax.numpy as jnp
from jax.experimental import pallas as pl
from jax.experimental.pallas import tpu as pltpu


def _round_up(x, m):
    return (x + m - 1) // m * m


def _cdiv(a, b):
    return -(-a // b)


def _vmem_capacity_bytes():
    """Physical VMEM per core; conservative (v7x) default if the query fails."""
    try:
        return int(pltpu.get_tpu_info().vmem_capacity_bytes)
    except Exception:
        return 64 << 20


def _tile_footprint_bytes(tm, tn, H, out_itemsize):
    return (
        tm * H * 2                    # x tile, bf16, single-buffered
        + 2 * H * 4                   # gamma fp32, double-buffered
        + 2 * tn * H * 2              # bf16 weight slab, double-buffered
        + 2 * tm * tn * out_itemsize  # out tile, double-buffered
        + tm * H * 2                  # xn scratch (bf16)
    )


def _select_tiles(M, V, H, out_itemsize, budget_bytes):
    """Pick (tm, tn).  tm first (weight-reuse roofline), then tn (step count)."""
    tn_max = min(1024, _round_up(V, 128))
    tm_cap = _round_up(M, 16)

    def fits(tm, tn):
        return _tile_footprint_bytes(tm, tn, H, out_itemsize) <= budget_bytes

    tm = min(16, tm_cap)
    for cand in (1024, 768, 512, 384, 256, 128, 64, 32, 16):
        c = min(cand, tm_cap)
        if fits(c, min(512, tn_max)):
            tm = c
            break

    tn = 128
    for cand in (1024, 512, 256, 128):
        c = min(cand, tn_max)
        if fits(tm, c):
            tn = c
            break
    return tm, tn


def _rmsnorm_lmhead_kernel(x_ref, g_ref, w_ref, o_ref, xn_ref, *, eps):
    # x_ref : (tm, H)  input row tile (bf16)
    # g_ref : (1, H)   RMSNorm gamma (fp32)
    # w_ref : (tn, H)  lm_head weight slab, bf16, native (V, H) layout
    # o_ref : (tm, tn) logits tile
    # xn_ref: (tm, H)  bf16 VMEM scratch -- cached normalized activations
    @pl.when(pl.program_id(1) == 0)
    def _():
        x = x_ref[...].astype(jnp.float32)
        var = jnp.mean(x * x, axis=-1, keepdims=True)
        xn = x * jax.lax.rsqrt(var + eps) * g_ref[...].astype(jnp.float32)
        xn_ref[...] = xn.astype(xn_ref.dtype)

    # (tm, H) contracted with (tn, H) on H -> (tm, tn); bf16 in, f32 accum.
    o_ref[...] = jax.lax.dot_general(
        xn_ref[...],
        w_ref[...],
        dimension_numbers=(((1,), (1,)), ((), ())),
        preferred_element_type=jnp.float32,
    ).astype(o_ref.dtype)


def llama_part2(x, norm_weight, lm_head_weight, *, eps=1e-6, tm=None, tn=None,
                out_dtype=jnp.bfloat16):
    """x: (B, S, H), norm_weight: (H,), lm_head_weight: (V, H) -> (B, S, V).

    Pass out_dtype=x.dtype for exact output-dtype parity with the PyTorch
    module; bf16 logits halve the M*V writeback and are the production default.
    """
    B, S, H = x.shape
    V, H2 = lm_head_weight.shape
    assert H == H2
    M = B * S
    out_itemsize = jnp.dtype(out_dtype).itemsize

    # Generation-aware VMEM budget (v7x: 64 MiB, v5e/v6e: 128 MiB physical).
    vmem_cap = _vmem_capacity_bytes()
    budget = min(vmem_cap - (16 << 20), 96 << 20)
    budget = max(budget, 16 << 20)

    auto_tm, auto_tn = _select_tiles(M, V, H, out_itemsize, budget)
    if tm is None:
        tm = auto_tm
    if tn is None:
        tn = auto_tn
    tm = max(8, _round_up(min(tm, _round_up(M, 8)), 8))
    tn = max(128, _round_up(min(tn, _round_up(V, 128)), 128))

    # Ragged-M: split rows into near-equal sublane-aligned tiles so an
    # unlucky M (e.g. 260 with tm=256) doesn't nearly double the padded work.
    row_align = 16 if tm % 16 == 0 else 8
    n_row_tiles = _cdiv(M, tm)
    tm = _round_up(_cdiv(M, n_row_tiles), row_align)
    M_pad = n_row_tiles * tm
    V_pad = _round_up(V, tn)

    # bf16 activations (norm math stays fp32 in-kernel); fp32 gamma; bf16
    # weights streamed in their native (V, H) layout -- no transpose copy.
    x2d = x.reshape(M, H).astype(jnp.bfloat16)
    if M_pad != M:
        x2d = jnp.pad(x2d, ((0, M_pad - M), (0, 0)))
    gamma = norm_weight.astype(jnp.float32).reshape(1, H)
    w = lm_head_weight.astype(jnp.bfloat16)
    if V_pad != V:
        w = jnp.pad(w, ((0, V_pad - V), (0, 0)))

    vmem_bytes = _tile_footprint_bytes(tm, tn, H, out_itemsize)
    cap = min(max(vmem_cap - (4 << 20), 32 << 20), 100 << 20)
    vmem_limit = int(min(max(vmem_bytes + (8 << 20), 32 << 20), cap))

    kernel = functools.partial(_rmsnorm_lmhead_kernel, eps=eps)
    grid = (M_pad // tm, V_pad // tn)

    def _build_call(x_pipeline_mode):
        if x_pipeline_mode is not None:
            x_spec = pl.BlockSpec((tm, H), lambda i, j: (i, 0),
                                  pipeline_mode=x_pipeline_mode)
        else:
            x_spec = pl.BlockSpec((tm, H), lambda i, j: (i, 0))
        return pl.pallas_call(
            kernel,
            out_shape=jax.ShapeDtypeStruct((M_pad, V_pad), out_dtype),
            grid_spec=pltpu.PrefetchScalarGridSpec(
                num_scalar_prefetch=0,
                grid=grid,
                in_specs=[
                    x_spec,                                        # x rows (constant over j)
                    pl.BlockSpec((1, H), lambda i, j: (0, 0)),     # gamma
                    pl.BlockSpec((tn, H), lambda i, j: (j, 0)),    # weight slab
                ],
                out_specs=pl.BlockSpec((tm, tn), lambda i, j: (i, j)),
                scratch_shapes=[pltpu.VMEM((tm, H), jnp.bfloat16)],
            ),
            compiler_params=pltpu.CompilerParams(
                dimension_semantics=("parallel", "arbitrary"),
                vmem_limit_bytes=vmem_limit,
            ),
        )

    try:
        # Single-buffer the x tile: its block index is constant over the inner
        # vocab axis, so the second buffer is never used within a row tile;
        # frees tm*H*2 bytes of VMEM (matters on v7x's 64 MiB part).
        out2d = _build_call(pl.Buffered(1))(x2d, gamma, w)
    except Exception:
        # Fallback for jax builds that reject pipeline_mode / Buffered(1).
        out2d = _build_call(None)(x2d, gamma, w)

    if (M_pad, V_pad) != (M, V):
        out2d = out2d[:M, :V]
    return out2d.reshape(B, S, V)


def _reference(x, norm_weight, lm_head_weight, eps=1e-6):
    xf = x.astype(jnp.float32)
    var = jnp.mean(xf * xf, axis=-1, keepdims=True)
    h = xf * jax.lax.rsqrt(var + eps) * norm_weight
    return jnp.einsum("bsh,vh->bsv", h, lm_head_weight)


if __name__ == "__main__":
    # Small TPU-friendly shapes consistent with the module's forward.
    B, S, H, V = 2, 8, 128, 512
    key = jax.random.PRNGKey(0)
    kx, kg, kw = jax.random.split(key, 3)

    x = jax.random.normal(kx, (B, S, H), dtype=jnp.float32)
    norm_weight = 1.0 + 0.01 * jax.random.normal(kg, (H,), dtype=jnp.float32)
    lm_head_weight = 0.02 * jax.random.normal(kw, (V, H), dtype=jnp.float32)

    ref = _reference(x, norm_weight, lm_head_weight)

    # Auto-selected tiles (single grid step at these shapes), bf16 logits.
    out = jax.block_until_ready(llama_part2(x, norm_weight, lm_head_weight))
    assert out.shape == (B, S, V)
    assert jnp.allclose(out.astype(jnp.float32), ref, atol=2e-2, rtol=2e-2)

    # Small explicit tiles: exercises the multi-tile grid, the pl.when(j==0)
    # norm cache and its reset across row tiles (grid = (2, 4)).
    out_t = jax.block_until_ready(
        llama_part2(x, norm_weight, lm_head_weight, tm=8, tn=128))
    assert out_t.shape == (B, S, V)
    assert jnp.allclose(out_t.astype(jnp.float32), ref, atol=2e-2, rtol=2e-2)

    # fp32-logits path (exact output-dtype parity with the PyTorch module).
    out_f32 = jax.block_until_ready(
        llama_part2(x, norm_weight, lm_head_weight, out_dtype=jnp.float32))
    assert out_f32.dtype == jnp.float32
    assert jnp.allclose(out_f32, ref, atol=2e-2, rtol=2e-2)

    print("KERNEL_OK")
</pallas_src>

<mosaic_0001>
module attributes {stable_mosaic.version = 11 : i64} {
  func.func @_rmsnorm_lmhead_kernel(%arg0: i32, %arg1: i32, %arg2: memref<16x128xbf16, #tpu.memory_space<vmem>>, %arg3: memref<1x128xf32, #tpu.memory_space<vmem>>, %arg4: memref<512x128xbf16, #tpu.memory_space<vmem>>, %arg5: memref<16x512xbf16, #tpu.memory_space<vmem>>, %arg6: memref<16x128xbf16, #tpu.memory_space<vmem>>) attributes {dimension_semantics = [#tpu.dimension_semantics<parallel>, #tpu.dimension_semantics<arbitrary>], iteration_bounds = array<i64: 1, 1>, scalar_prefetch = 0 : i64, scratch_operands = 1 : i64, tpu.core_type = #tpu.core_type<tc>, window_params = [{pipeline_mode = #tpu.pipeline_mode<synchronous>, transform_indices = @transform_0, window_bounds = array<i64: 16, 128>}, {pipeline_mode = #tpu.pipeline_mode<synchronous>, transform_indices = @transform_1, window_bounds = array<i64: 1, 128>}, {transform_indices = @transform_2, window_bounds = array<i64: 512, 128>}, {transform_indices = @transform_3, window_bounds = array<i64: 16, 512>}]} {
    %c0_i32 = arith.constant 0 : i32
    %0 = arith.cmpi eq, %arg1, %c0_i32 : i32
    %1 = arith.extui %0 : i1 to i32
    %c0_i32_0 = arith.constant 0 : i32
    %2 = arith.cmpi ne, %1, %c0_i32_0 : i32
    scf.if %2 {
      %c0_6 = arith.constant 0 : index
      %c0_7 = arith.constant 0 : index
      %8 = vector.load %arg2[%c0_6, %c0_7] : memref<16x128xbf16, #tpu.memory_space<vmem>>, vector<16x128xbf16>
      %9 = arith.extf %8 : vector<16x128xbf16> to vector<16x128xf32>
      %10 = arith.mulf %9, %9 : vector<16x128xf32>
      %cst_8 = arith.constant dense<0.000000e+00> : vector<16xf32>
      %11 = vector.multi_reduction <add>, %10, %cst_8 [1] : vector<16x128xf32> to vector<16xf32>
      %12 = vector.shape_cast %11 : vector<16xf32> to vector<16x1xf32>
      %cst_9 = arith.constant 1.280000e+02 : f32
      %13 = vector.broadcast %cst_9 : f32 to vector<16x1xf32>
      %14 = arith.divf %12, %13 : vector<16x1xf32>
      %cst_10 = arith.constant 9.99999997E-7 : f32
      %15 = vector.broadcast %cst_10 : f32 to vector<16x1xf32>
      %16 = arith.addf %14, %15 : vector<16x1xf32>
      %17 = math.rsqrt %16 : vector<16x1xf32>
      %18 = vector.broadcast %17 : vector<16x1xf32> to vector<16x128xf32>
      %19 = arith.mulf %9, %18 : vector<16x128xf32>
      %c0_11 = arith.constant 0 : index
      %c0_12 = arith.constant 0 : index
      %20 = vector.load %arg3[%c0_11, %c0_12] : memref<1x128xf32, #tpu.memory_space<vmem>>, vector<1x128xf32>
      %21 = vector.broadcast %20 : vector<1x128xf32> to vector<16x128xf32>
      %22 = arith.mulf %19, %21 : vector<16x128xf32>
      %23 = arith.truncf %22 : vector<16x128xf32> to vector<16x128xbf16>
      %c0_13 = arith.constant 0 : index
      %c0_14 = arith.constant 0 : index
      %24 = vector.load %arg6[%c0_13, %c0_14] : memref<16x128xbf16, #tpu.memory_space<vmem>>, vector<16x128xbf16>
      tpu.vector_store %arg6[%c0_13, %c0_14], %23 {strides = array<i32>} : memref<16x128xbf16, #tpu.memory_space<vmem>>, vector<16x128xbf16>,
    } else {
    }
    %c0 = arith.constant 0 : index
    %c0_1 = arith.constant 0 : index
    %3 = vector.load %arg6[%c0, %c0_1] : memref<16x128xbf16, #tpu.memory_space<vmem>>, vector<16x128xbf16>
    %c0_2 = arith.constant 0 : index
    %c0_3 = arith.constant 0 : index
    %4 = vector.load %arg4[%c0_2, %c0_3] : memref<512x128xbf16, #tpu.memory_space<vmem>>, vector<512x128xbf16>
    %cst = arith.constant dense<0.000000e+00> : vector<16x512xf32>
    %5 = tpu.matmul %3, %4, %cst {dimension_numbers = #tpu.dot_dimension_numbers<[1], [1], [0], [0], [0, 0, 1, 0], [], []>} : vector<16x128xbf16>, vector<512x128xbf16>, vector<16x512xf32> -> vector<16x512xf32>
    %6 = arith.truncf %5 : vector<16x512xf32> to vector<16x512xbf16>
    %c0_4 = arith.constant 0 : index
    %c0_5 = arith.constant 0 : index
    %7 = vector.load %arg5[%c0_4, %c0_5] : memref<16x512xbf16, #tpu.memory_space<vmem>>, vector<16x512xbf16>
    tpu.vector_store %arg5[%c0_4, %c0_5], %6 {strides = array<i32>} : memref<16x512xbf16, #tpu.memory_space<vmem>>, vector<16x512xbf16>,
    return
  }
  func.func @transform_0(%arg0: i32, %arg1: i32) -> (i32, i32) {
    %c0_i32 = arith.constant 0 : i32
    %c0_i32_0 = arith.constant 0 : i32
    return %arg0, %c0_i32 : i32, i32
  }
  func.func @transform_1(%arg0: i32, %arg1: i32) -> (i32, i32) {
    %c0_i32 = arith.constant 0 : i32
    %c0_i32_0 = arith.constant 0 : i32
    %c0_i32_1 = arith.constant 0 : i32
    return %c0_i32, %c0_i32_0 : i32, i32
  }
  func.func @transform_2(%arg0: i32, %arg1: i32) -> (i32, i32) {
    %c0_i32 = arith.constant 0 : i32
    %c0_i32_0 = arith.constant 0 : i32
    return %arg1, %c0_i32 : i32, i32
  }
  func.func @transform_3(%arg0: i32, %arg1: i32) -> (i32, i32) {
    %c0_i32 = arith.constant 0 : i32
    return %arg0, %arg1 : i32, i32
  }
}

module attributes {stable_mosaic.version = 11 : i64} {
  func.func @_rmsnorm_lmhead_kernel(%arg0: i32, %arg1: i32, %arg2: memref<16x128xbf16, #tpu.memory_space<vmem>>, %arg3: memref<1x128xf32, #tpu.memory_space<vmem>>, %arg4: memref<512x128xbf16, #tpu.memory_space<vmem>>, %arg5: memref<16x512xbf16, #tpu.memory_space<vmem>>, %arg6: memref<16x128xbf16, #tpu.memory_space<vmem>>) attributes {dimension_semantics = [#tpu.dimension_semantics<parallel>, #tpu.dimension_semantics<arbitrary>], iteration_bounds = array<i64: 1, 1>, scalar_prefetch = 0 : i64, scratch_operands = 1 : i64, tpu.core_type = #tpu.core_type<tc>, window_params = [{transform_indices = @transform_0, window_bounds = array<i64: 16, 128>}, {pipeline_mode = #tpu.pipeline_mode<synchronous>, transform_indices = @transform_1, window_bounds = array<i64: 1, 128>}, {transform_indices = @transform_2, window_bounds = array<i64: 512, 128>}, {transform_indices = @transform_3, window_bounds = array<i64: 16, 512>}]} {
    %c0_i32 = arith.constant 0 : i32
    %0 = arith.cmpi eq, %arg1, %c0_i32 : i32
    %1 = arith.extui %0 : i1 to i32
    %c0_i32_0 = arith.constant 0 : i32
    %2 = arith.cmpi ne, %1, %c0_i32_0 : i32
    scf.if %2 {
      %c0_6 = arith.constant 0 : index
      %c0_7 = arith.constant 0 : index
      %8 = vector.load %arg2[%c0_6, %c0_7] : memref<16x128xbf16, #tpu.memory_space<vmem>>, vector<16x128xbf16>
      %9 = arith.extf %8 : vector<16x128xbf16> to vector<16x128xf32>
      %10 = arith.mulf %9, %9 : vector<16x128xf32>
      %cst_8 = arith.constant dense<0.000000e+00> : vector<16xf32>
      %11 = vector.multi_reduction <add>, %10, %cst_8 [1] : vector<16x128xf32> to vector<16xf32>
      %12 = vector.shape_cast %11 : vector<16xf32> to vector<16x1xf32>
      %cst_9 = arith.constant 1.280000e+02 : f32
      %13 = vector.broadcast %cst_9 : f32 to vector<16x1xf32>
      %14 = arith.divf %12, %13 : vector<16x1xf32>
      %cst_10 = arith.constant 9.99999997E-7 : f32
      %15 = vector.broadcast %cst_10 : f32 to vector<16x1xf32>
      %16 = arith.addf %14, %15 : vector<16x1xf32>
      %17 = math.rsqrt %16 : vector<16x1xf32>
      %18 = vector.broadcast %17 : vector<16x1xf32> to vector<16x128xf32>
      %19 = arith.mulf %9, %18 : vector<16x128xf32>
      %c0_11 = arith.constant 0 : index
      %c0_12 = arith.constant 0 : index
      %20 = vector.load %arg3[%c0_11, %c0_12] : memref<1x128xf32, #tpu.memory_space<vmem>>, vector<1x128xf32>
      %21 = vector.broadcast %20 : vector<1x128xf32> to vector<16x128xf32>
      %22 = arith.mulf %19, %21 : vector<16x128xf32>
      %23 = arith.truncf %22 : vector<16x128xf32> to vector<16x128xbf16>
      %c0_13 = arith.constant 0 : index
      %c0_14 = arith.constant 0 : index
      %24 = vector.load %arg6[%c0_13, %c0_14] : memref<16x128xbf16, #tpu.memory_space<vmem>>, vector<16x128xbf16>
      tpu.vector_store %arg6[%c0_13, %c0_14], %23 {strides = array<i32>} : memref<16x128xbf16, #tpu.memory_space<vmem>>, vector<16x128xbf16>,
    } else {
    }
    %c0 = arith.constant 0 : index
    %c0_1 = arith.constant 0 : index
    %3 = vector.load %arg6[%c0, %c0_1] : memref<16x128xbf16, #tpu.memory_space<vmem>>, vector<16x128xbf16>
    %c0_2 = arith.constant 0 : index
    %c0_3 = arith.constant 0 : index
    %4 = vector.load %arg4[%c0_2, %c0_3] : memref<512x128xbf16, #tpu.memory_space<vmem>>, vector<512x128xbf16>
    %cst = arith.constant dense<0.000000e+00> : vector<16x512xf32>
    %5 = tpu.matmul %3, %4, %cst {dimension_numbers = #tpu.dot_dimension_numbers<[1], [1], [0], [0], [0, 0, 1, 0], [], []>} : vector<16x128xbf16>, vector<512x128xbf16>, vector<16x512xf32> -> vector<16x512xf32>
    %6 = arith.truncf %5 : vector<16x512xf32> to vector<16x512xbf16>
    %c0_4 = arith.constant 0 : index
    %c0_5 = arith.constant 0 : index
    %7 = vector.load %arg5[%c0_4, %c0_5] : memref<16x512xbf16, #tpu.memory_space<vmem>>, vector<16x512xbf16>
    tpu.vector_store %arg5[%c0_4, %c0_5], %6 {strides = array<i32>} : memref<16x512xbf16, #tpu.memory_space<vmem>>, vector<16x512xbf16>,
    return
  }
  func.func @transform_0(%arg0: i32, %arg1: i32) -> (i32, i32) {
    %c0_i32 = arith.constant 0 : i32
    %c0_i32_0 = arith.constant 0 : i32
    return %arg0, %c0_i32 : i32, i32
  }
  func.func @transform_1(%arg0: i32, %arg1: i32) -> (i32, i32) {
    %c0_i32 = arith.constant 0 : i32
    %c0_i32_0 = arith.constant 0 : i32
    %c0_i32_1 = arith.constant 0 : i32
    return %c0_i32, %c0_i32_0 : i32, i32
  }
  func.func @transform_2(%arg0: i32, %arg1: i32) -> (i32, i32) {
    %c0_i32 = arith.constant 0 : i32
    %c0_i32_0 = arith.constant 0 : i32
    return %arg1, %c0_i32 : i32, i32
  }
  func.func @transform_3(%arg0: i32, %arg1: i32) -> (i32, i32) {
    %c0_i32 = arith.constant 0 : i32
    return %arg0, %arg1 : i32, i32
  }
}

</mosaic_0001>

<bundles_post_ra>
// kernel: tpu_custom_call.1
= control target key start
LH: loop header
LB: loop body
LE: loop exit
PB: predicated region body
PF: predicated region fallthrough
CT: control target
= control target key end

     0   :  { %8 = vsyncpa [#allocation4], 0  ;;  %s739_s0 = inlined_call_operand.hbm [shape: bf16[16,128], index: 0, kind: input, shape index: {}]   ;;  %s740_s1 = inlined_call_operand.vmem [shape: f32[1,128], index: 1, kind: input, shape index: {}]   ;;  %s741_s2 = inlined_call_operand.hbm [shape: bf16[512,128], index: 2, kind: input, shape index: {}]   ;;  %s742_s3 = inlined_call_operand.hbm [shape: bf16[16,512], index: 3, kind: output, shape index: {}]  }
   0x1   :  { %9 = vsyncpa [#allocation7], 0 }
   0x2   :  { %10 = vsyncpa [#allocation5], 0  ;;  %s663_s12 = smov [#allocation3]   ;;  %s591_s16 = scalar_lea.hbm %s739_s0, 128 }
   0x3   :  { %s16_s13 = sshll.u32 %s663_s12, 4  ;;  %p592_p0 = scmp.ne.s32.totalorder %s739_s0, %s591_s16  ;;  %s17_s13 = int_to_ptr.vmem [resolvable:$true] %s16_s13 }
   0x4   :  { %p595_p1 = scmp.lt.u32.totalorder %s591_s16, %s739_s0 }
   0x6   :  { %p597_p2 = pnand %p595_p1, %p592_p0 }
   0x8   :  { %600 = shalt.err (!%p597_p2)
}
   0x9   :  { %s601_s21 = scalar_lea.vmem %s17_s13, 128  ;;  %p606_p4 = scmp.lt.s32.totalorder %s17_s13, %s17_s13 }
   0xa   :  { %p602_p3 = scmp.ne.s32.totalorder %s17_s13, %s601_s21  ;;  %p607_p5 = scmp.lt.s32.totalorder %s601_s21, %s601_s21 }
   0xc   :  { %p608_p6 = por %p607_p5, %p606_p4 }
   0xe   :  { %p609_p7 = pnand %p608_p6, %p602_p3 }
  0x10   :  { %612 = shalt.err (!%p609_p7)
}
  0x11   :  { %s664_s22 = smov 64   ;;  %s665_s23 = smov 4  }
  0x12   :  { %22 = dma.hbm_to_vmem [thread:$0]  %s739_s0, 128, %s17_s13, [#allocation4], %s664_s22, %s664_s22, %s665_s23  }
  0x13   :  { %s666_s26 = smov [#allocation6]   ;;  %s613_s30 = scalar_lea.hbm %s741_s2, 4096 }
  0x14   :  { %s30_s27 = sshll.u32 %s666_s26, 4  ;;  %p614_p8 = scmp.ne.s32.totalorder %s741_s2, %s613_s30  ;;  %s31_s27 = int_to_ptr.vmem [resolvable:$true] %s30_s27 }
  0x15   :  { %p617_p9 = scmp.lt.u32.totalorder %s613_s30, %s741_s2 }
  0x17   :  { %p619_p10 = pnand %p617_p9, %p614_p8 }
  0x19   :  { %622 = shalt.err (!%p619_p10)
}
  0x1a   :  { %s623_s8 = scalar_lea.vmem %s31_s27, 4096  ;;  %p628_p12 = scmp.lt.s32.totalorder %s31_s27, %s31_s27 }
  0x1b   :  { %p624_p11 = scmp.ne.s32.totalorder %s31_s27, %s623_s8  ;;  %p629_p13 = scmp.lt.s32.totalorder %s623_s8, %s623_s8 }
  0x1d   :  { %p630_p0 = por %p629_p13, %p628_p12 }
  0x1f   :  { %p631_p1 = pnand %p630_p0, %p624_p11 }
  0x21   :  { %634 = shalt.err (!%p631_p1)
}
  0x22   :  { %36 = dma.hbm_to_vmem [thread:$0]  %s741_s2, 4096, %s31_s27, [#allocation7], %s664_s22, %s664_s22, %s665_s23  }
  0x23   :  { %657 = dma.done.wait [#allocation4], 128  }
  0x24   :  { %658 = vsyncadd [#allocation4], 4294967168 }
  0x25   :  { %659 = dma.done.wait [#allocation7], 4096  }
  0x26   :  { %660 = vsyncadd [#allocation7], 4294963200  ;;  %v509_v0 = vld [vmem:[#allocation3] sm:$0xff]   ;;  %v555_v3 = vld [vmem:[#allocation6 + $0x40] sm:$0xff]   ;;  %s667_s11 = smov [#allocation8]  }
  0x27   :  { %v714_v1 = vunpack.c.l.bf16 %v509_v0  ;;  %v716_v2 = vunpack.c.h.bf16 %v509_v0  ;;  %v556_v4 = vld [vmem:[#allocation6 + $0xc0] sm:$0xff]   ;;  %512 = vmatprep.subr.bf16.mxu0 %v555_v3  ;;  %v559_v9 = vld [vmem:[#allocation6 + $0x48] sm:$0xff]   ;;  %v563_v13 = vld [vmem:[#allocation6 + $0x50] sm:$0xff]   ;;  %s454_s12 = sshll.u32 %s667_s11, 4  ;;  %s455_s12 = int_to_ptr.vmem [resolvable:$true] %s454_s12 }
  0x28   :  { %v557_v6 = vld [vmem:[#allocation6] sm:$0xff]   ;;  %530 = vmatprep.subr.bf16.mxu1 %v556_v4  ;;  %v560_v10 = vld [vmem:[#allocation6 + $0xc8] sm:$0xff]   ;;  %v564_v14 = vld [vmem:[#allocation6 + $0xd0] sm:$0xff]   ;;  %p640_p3 = scmp.lt.s32.totalorder %s455_s12, %s455_s12 }
  0x29   :  { %v52_v5 = vmul.f32 %v714_v1, %v714_v1  ;;  %v558_v7 = vld [vmem:[#allocation6 + $0x80] sm:$0xff]   ;;  %v53_v8 = vmul.f32 %v716_v2, %v716_v2  ;;  %513 = vmatpush3.bf16.xpose.msra.mxu0 %v557_v6  ;;  %v561_v11 = vld [vmem:[#allocation6 + $0x8] sm:$0xff]   ;;  %v565_v15 = vld [vmem:[#allocation6 + $0x10] sm:$0xff]  }
  0x2a   :  { %531 = vmatpush3.bf16.xpose.msra.mxu1 %v558_v7  ;;  %514 = vmatprep.subr.bf16.mxu0 %v559_v9  ;;  %v562_v12 = vld [vmem:[#allocation6 + $0x88] sm:$0xff]   ;;  %v566_v16 = vld [vmem:[#allocation6 + $0x90] sm:$0xff]   ;;  %v567_v17 = vld [vmem:[#allocation6 + $0x58] sm:$0xff]  }
  0x2b   :  { %54 = vadd.xlane.f32.xlu0 %v52_v5  ;;  %532 = vmatprep.subr.bf16.mxu1 %v560_v10  ;;  %v568_v18 = vld [vmem:[#allocation6 + $0xd8] sm:$0xff]   ;;  %v571_v21 = vld [vmem:[#allocation6 + $0x60] sm:$0xff]   ;;  %v575_v25 = vld [vmem:[#allocation6 + $0x68] sm:$0xff]  }
  0x2c   :  { %v569_v19 = vld [vmem:[#allocation6 + $0x18] sm:$0xff]   ;;  %v572_v22 = vld [vmem:[#allocation6 + $0xe0] sm:$0xff]   ;;  %v576_v26 = vld [vmem:[#allocation6 + $0xe8] sm:$0xff]  }
  0x2d   :  { %v570_v20 = vld [vmem:[#allocation6 + $0x98] sm:$0xff]   ;;  %v573_v23 = vld [vmem:[#allocation6 + $0x20] sm:$0xff]   ;;  %v577_v27 = vld [vmem:[#allocation6 + $0x28] sm:$0xff]  }
  0x2e   :  { %v574_v24 = vld [vmem:[#allocation6 + $0xa0] sm:$0xff]   ;;  %v578_v28 = vld [vmem:[#allocation6 + $0xa8] sm:$0xff]   ;;  %v579_v29 = vld [vmem:[#allocation6 + $0x70] sm:$0xff]  }
  0x2f   :  { %56 = vadd.xlane.f32.xlu0 %v53_v8  ;;  %v580_v30 = vld [vmem:[#allocation6 + $0xf0] sm:$0xff]   ;;  %v583_v33 = vld [vmem:[#allocation6 + $0x78] sm:$0xff]  }
  0x30   :  { %v581_v31 = vld [vmem:[#allocation6 + $0x30] sm:$0xff]   ;;  %v584_v34 = vld [vmem:[#allocation6 + $0xf8] sm:$0xff]  }
  0x31   :  { %515 = vmatpush3.bf16.xpose.msra.mxu0 %v561_v11  ;;  %v582_v32 = vld [vmem:[#allocation6 + $0xb0] sm:$0xff]   ;;  %v585_v35 = vld [vmem:[#allocation6 + $0x38] sm:$0xff]  }
  0x32   :  { %533 = vmatpush3.bf16.xpose.msra.mxu1 %v562_v12  ;;  %516 = vmatprep.subr.bf16.mxu0 %v563_v13  ;;  %v586_v36 = vld [vmem:[#allocation6 + $0xb8] sm:$0xff]  }
  0x33   :  { %534 = vmatprep.subr.bf16.mxu1 %v564_v14  ;;  %v467_v46 = vld [vmem:[%s740_s1] ss:$0 sm:$0xff]  ;;  %s635_s1 = scalar_lea.vmem %s455_s12, 512 }
  0x34   :  { %p636_p2 = scmp.ne.s32.totalorder %s455_s12, %s635_s1  ;;  %p641_p4 = scmp.lt.s32.totalorder %s635_s1, %s635_s1 }
  0x36   :  { %p642_p5 = por %p641_p4, %p640_p3 }
  0x38   :  { %p643_p6 = pnand %p642_p5, %p636_p2 }
  0x39   :  { %517 = vmatpush3.bf16.xpose.msra.mxu0 %v565_v15 }
  0x3a   :  { %535 = vmatpush3.bf16.xpose.msra.mxu1 %v566_v16  ;;  %518 = vmatprep.subr.bf16.mxu0 %v567_v17 }
  0x3b   :  { %536 = vmatprep.subr.bf16.mxu1 %v568_v18 }
  0x41   :  { %519 = vmatpush3.bf16.xpose.msra.mxu0 %v569_v19 }
  0x42   :  { %537 = vmatpush3.bf16.xpose.msra.mxu1 %v570_v20  ;;  %520 = vmatprep.subr.bf16.mxu0 %v571_v21 }
  0x43   :  { %538 = vmatprep.subr.bf16.mxu1 %v572_v22 }
  0x49   :  { %521 = vmatpush3.bf16.xpose.msra.mxu0 %v573_v23 }
  0x4a   :  { %539 = vmatpush3.bf16.xpose.msra.mxu1 %v574_v24  ;;  %522 = vmatprep.subr.bf16.mxu0 %v575_v25 }
  0x4b   :  { %540 = vmatprep.subr.bf16.mxu1 %v576_v26 }
  0x51   :  { %523 = vmatpush3.bf16.xpose.msra.mxu0 %v577_v27 }
  0x52   :  { %541 = vmatpush3.bf16.xpose.msra.mxu1 %v578_v28  ;;  %524 = vmatprep.subr.bf16.mxu0 %v579_v29 }
  0x53   :  { %542 = vmatprep.subr.bf16.mxu1 %v580_v30 }
  0x59   :  { %525 = vmatpush3.bf16.xpose.msra.mxu0 %v581_v31 }
  0x5a   :  { %543 = vmatpush3.bf16.xpose.msra.mxu1 %v582_v32  ;;  %526 = vmatprep.subr.bf16.mxu0 %v583_v33 }
  0x5b   :  { %544 = vmatprep.subr.bf16.mxu1 %v584_v34 }
  0x61   :  { %527 = vmatpush3.bf16.xpose.msra.mxu0 %v585_v35 }
  0x62   :  { %545 = vmatpush3.bf16.xpose.msra.mxu1 %v586_v36 }
  0xb8   :  { %v55_v37 = vpop.xlane.xlu0 %54 }
  0xb9   :  { %v59_v38 = vmul.f32 0.0078125, %v55_v37 }
  0xbb   :  { %v61_v39 = vadd.f32 1e-06, %v59_v38 }
  0xbc   :  { %v57_v40 = vpop.xlane.xlu0 %56 }
  0xbd   :  { %587 = vrsqrt.f32 %v61_v39  ;;  %v60_v41 = vmul.f32 0.0078125, %v57_v40 }
  0xbf   :  { %v62_v42 = vadd.f32 1e-06, %v60_v41 }
  0xc1   :  { %589 = vrsqrt.f32 %v62_v42 }
  0xc7   :  { %v588_v43 = vpop.eup %587 }
  0xc8   :  { %v65_v44 = vmul.f32 %v588_v43, %v714_v1 }
  0xca   :  { %v74_v48 = vmul.f32 %v467_v46, %v65_v44 }
  0xcb   :  { %v590_v45 = vpop.eup %589 }
  0xcc   :  { %v66_v47 = vmul.f32 %v590_v45, %v716_v2 }
  0xce   :  { %v75_v49 = vmul.f32 %v467_v46, %v66_v47 }
  0xd0   :  { %v76_v50 = vpack.c.bf16 %v75_v49, %v74_v48 }
  0xd2   :  { %528 = vmatprep.mubr.bf16.mxu0 %v76_v50  ;;  %546 = vmatprep.mubr.bf16.mxu1 %v76_v50 }
  0xd3   :  { %529 = vmatmul.mubr.bf16.vlgmr.msra.gmra.mrb[0].mxu0 %v76_v50  ;;  %547 = vmatmul.mubr.bf16.vlgmr.msra.gmra.mrb[0].mxu1 %v76_v50 }
 0x1a6   :  { %v369_v51 = vpop.f32.mrb[0].mxu0  ;;  %v412_v52 = vpop.f32.mrb[0].mxu1 }
 0x1a7   :  { %v371_v53 = vpop.f32.mrb[1].mxu0  ;;  %v414_v54 = vpop.f32.mrb[1].mxu1 }
 0x1a8   :  { %v504_v55 = vpack.c.bf16 %v371_v53, %v369_v51  ;;  %v505_v56 = vpack.c.bf16 %v414_v54, %v412_v52  ;;  %v373_v57 = vpop.f32.mrb[2].mxu0  ;;  %v416_v58 = vpop.f32.mrb[2].mxu1 }
 0x1a9   :  { %v375_v59 = vpop.f32.mrb[3].mxu0  ;;  %v418_v60 = vpop.f32.mrb[3].mxu1 }
 0x1aa   :  { %445 = vst [vmem:[#allocation8] sm:$0xff] %v504_v55  ;;  %446 = vst [vmem:[#allocation8 + $0x8] sm:$0xff] %v505_v56  ;;  %v506_v61 = vpack.c.bf16 %v375_v59, %v373_v57  ;;  %v507_v62 = vpack.c.bf16 %v418_v60, %v416_v58 }
 0x1ac   :  { %447 = vst [vmem:[#allocation8 + $0x10] sm:$0xff] %v506_v61  ;;  %448 = vst [vmem:[#allocation8 + $0x18] sm:$0xff] %v507_v62 }
 0x1ad   :  { %646 = shalt.err (!%p643_p6)
}
 0x1ae   :  { %s647_s15 = scalar_lea.hbm %s742_s3, 512 }
 0x1af   :  { %p648_p7 = scmp.ne.s32.totalorder %s742_s3, %s647_s15  ;;  %p651_p8 = scmp.lt.u32.totalorder %s647_s15, %s742_s3 }
 0x1b1   :  { %p653_p9 = pnand %p651_p8, %p648_p7 }
 0x1b3   :  { %656 = shalt.err (!%p653_p9)
}
 0x1b4   :  { %s668_s20 = smov 256   ;;  %s669_s21 = smov 16  }
 0x1b5   :  { %460 = dma.vmem_to_hbm [thread:$0]  %s455_s12, 512, %s742_s3, [#allocation5], %s668_s20, %s668_s20, %s669_s21  }
 0x1b6   :  { %661 = dma.done.wait [#allocation5], 512  }
 0x1b7   :  { %662 = vsyncadd [#allocation5], 4294966784 }
 0x1b8   :  { %464 = vsyncpa [#allocation4], 1 }
 0x1b9   :  { %465 = vsyncpa [#allocation7], 1 }
 0x1ba   :  { %466 = vsyncpa [#allocation5], 1 }

// kernel: tpu_custom_call.1
= control target key start
LH: loop header
LB: loop body
LE: loop exit
PB: predicated region body
PF: predicated region fallthrough
CT: control target
= control target key end

     0   :  { %8 = vsyncpa [#allocation4], 0  ;;  %s739_s0 = inlined_call_operand.hbm [shape: bf16[16,128], index: 0, kind: input, shape index: {}]   ;;  %s740_s1 = inlined_call_operand.vmem [shape: f32[1,128], index: 1, kind: input, shape index: {}]   ;;  %s741_s2 = inlined_call_operand.hbm [shape: bf16[512,128], index: 2, kind: input, shape index: {}]   ;;  %s742_s3 = inlined_call_operand.hbm [shape: bf16[16,512], index: 3, kind: output, shape index: {}]  }
   0x1   :  { %9 = vsyncpa [#allocation7], 0 }
   0x2   :  { %10 = vsyncpa [#allocation5], 0  ;;  %s663_s12 = smov [#allocation3]   ;;  %s591_s16 = scalar_lea.hbm %s739_s0, 128 }
   0x3   :  { %s16_s13 = sshll.u32 %s663_s12, 4  ;;  %p592_p0 = scmp.ne.s32.totalorder %s739_s0, %s591_s16  ;;  %s17_s13 = int_to_ptr.vmem [resolvable:$true] %s16_s13 }
   0x4   :  { %p595_p1 = scmp.lt.u32.totalorder %s591_s16, %s739_s0 }
   0x6   :  { %p597_p2 = pnand %p595_p1, %p592_p0 }
   0x8   :  { %600 = shalt.err (!%p597_p2)
}
   0x9   :  { %s601_s21 = scalar_lea.vmem %s17_s13, 128  ;;  %p606_p4 = scmp.lt.s32.totalorder %s17_s13, %s17_s13 }
   0xa   :  { %p602_p3 = scmp.ne.s32.totalorder %s17_s13, %s601_s21  ;;  %p607_p5 = scmp.lt.s32.totalorder %s601_s21, %s601_s21 }
   0xc   :  { %p608_p6 = por %p607_p5, %p606_p4 }
   0xe   :  { %p609_p7 = pnand %p608_p6, %p602_p3 }
  0x10   :  { %612 = shalt.err (!%p609_p7)
}
  0x11   :  { %s664_s22 = smov 64   ;;  %s665_s23 = smov 4  }
  0x12   :  { %22 = dma.hbm_to_vmem [thread:$0]  %s739_s0, 128, %s17_s13, [#allocation4], %s664_s22, %s664_s22, %s665_s23  }
  0x13   :  { %s666_s26 = smov [#allocation6]   ;;  %s613_s30 = scalar_lea.hbm %s741_s2, 4096 }
  0x14   :  { %s30_s27 = sshll.u32 %s666_s26, 4  ;;  %p614_p8 = scmp.ne.s32.totalorder %s741_s2, %s613_s30  ;;  %s31_s27 = int_to_ptr.vmem [resolvable:$true] %s30_s27 }
  0x15   :  { %p617_p9 = scmp.lt.u32.totalorder %s613_s30, %s741_s2 }
  0x17   :  { %p619_p10 = pnand %p617_p9, %p614_p8 }
  0x19   :  { %622 = shalt.err (!%p619_p10)
}
  0x1a   :  { %s623_s8 = scalar_lea.vmem %s31_s27, 4096  ;;  %p628_p12 = scmp.lt.s32.totalorder %s31_s27, %s31_s27 }
  0x1b   :  { %p624_p11 = scmp.ne.s32.totalorder %s31_s27, %s623_s8  ;;  %p629_p13 = scmp.lt.s32.totalorder %s623_s8, %s623_s8 }
  0x1d   :  { %p630_p0 = por %p629_p13, %p628_p12 }
  0x1f   :  { %p631_p1 = pnand %p630_p0, %p624_p11 }
  0x21   :  { %634 = shalt.err (!%p631_p1)
}
  0x22   :  { %36 = dma.hbm_to_vmem [thread:$0]  %s741_s2, 4096, %s31_s27, [#allocation7], %s664_s22, %s664_s22, %s665_s23  }
  0x23   :  { %657 = dma.done.wait [#allocation4], 128  }
  0x24   :  { %658 = vsyncadd [#allocation4], 4294967168 }
  0x25   :  { %659 = dma.done.wait [#allocation7], 4096  }
  0x26   :  { %660 = vsyncadd [#allocation7], 4294963200  ;;  %v509_v0 = vld [vmem:[#allocation3] sm:$0xff]   ;;  %v555_v3 = vld [vmem:[#allocation6 + $0x40] sm:$0xff]   ;;  %s667_s11 = smov [#allocation8]  }
  0x27   :  { %v714_v1 = vunpack.c.l.bf16 %v509_v0  ;;  %v716_v2 = vunpack.c.h.bf16 %v509_v0  ;;  %v556_v4 = vld [vmem:[#allocation6 + $0xc0] sm:$0xff]   ;;  %512 = vmatprep.subr.bf16.mxu0 %v555_v3  ;;  %v559_v9 = vld [vmem:[#allocation6 + $0x48] sm:$0xff]   ;;  %v563_v13 = vld [vmem:[#allocation6 + $0x50] sm:$0xff]   ;;  %s454_s12 = sshll.u32 %s667_s11, 4  ;;  %s455_s12 = int_to_ptr.vmem [resolvable:$true] %s454_s12 }
  0x28   :  { %v557_v6 = vld [vmem:[#allocation6] sm:$0xff]   ;;  %530 = vmatprep.subr.bf16.mxu1 %v556_v4  ;;  %v560_v10 = vld [vmem:[#allocation6 + $0xc8] sm:$0xff]   ;;  %v564_v14 = vld [vmem:[#allocation6 + $0xd0] sm:$0xff]   ;;  %p640_p3 = scmp.lt.s32.totalorder %s455_s12, %s455_s12 }
  0x29   :  { %v52_v5 = vmul.f32 %v714_v1, %v714_v1  ;;  %v558_v7 = vld [vmem:[#allocation6 + $0x80] sm:$0xff]   ;;  %v53_v8 = vmul.f32 %v716_v2, %v716_v2  ;;  %513 = vmatpush3.bf16.xpose.msra.mxu0 %v557_v6  ;;  %v561_v11 = vld [vmem:[#allocation6 + $0x8] sm:$0xff]   ;;  %v565_v15 = vld [vmem:[#allocation6 + $0x10] sm:$0xff]  }
  0x2a   :  { %531 = vmatpush3.bf16.xpose.msra.mxu1 %v558_v7  ;;  %514 = vmatprep.subr.bf16.mxu0 %v559_v9  ;;  %v562_v12 = vld [vmem:[#allocation6 + $0x88] sm:$0xff]   ;;  %v566_v16 = vld [vmem:[#allocation6 + $0x90] sm:$0xff]   ;;  %v567_v17 = vld [vmem:[#allocation6 + $0x58] sm:$0xff]  }
  0x2b   :  { %54 = vadd.xlane.f32.xlu0 %v52_v5  ;;  %532 = vmatprep.subr.bf16.mxu1 %v560_v10  ;;  %v568_v18 = vld [vmem:[#allocation6 + $0xd8] sm:$0xff]   ;;  %v571_v21 = vld [vmem:[#allocation6 + $0x60] sm:$0xff]   ;;  %v575_v25 = vld [vmem:[#allocation6 + $0x68] sm:$0xff]  }
  0x2c   :  { %v569_v19 = vld [vmem:[#allocation6 + $0x18] sm:$0xff]   ;;  %v572_v22 = vld [vmem:[#allocation6 + $0xe0] sm:$0xff]   ;;  %v576_v26 = vld [vmem:[#allocation6 + $0xe8] sm:$0xff]  }
  0x2d   :  { %v570_v20 = vld [vmem:[#allocation6 + $0x98] sm:$0xff]   ;;  %v573_v23 = vld [vmem:[#allocation6 + $0x20] sm:$0xff]   ;;  %v577_v27 = vld [vmem:[#allocation6 + $0x28] sm:$0xff]  }
  0x2e   :  { %v574_v24 = vld [vmem:[#allocation6 + $0xa0] sm:$0xff]   ;;  %v578_v28 = vld [vmem:[#allocation6 + $0xa8] sm:$0xff]   ;;  %v579_v29 = vld [vmem:[#allocation6 + $0x70] sm:$0xff]  }
  0x2f   :  { %56 = vadd.xlane.f32.xlu0 %v53_v8  ;;  %v580_v30 = vld [vmem:[#allocation6 + $0xf0] sm:$0xff]   ;;  %v583_v33 = vld [vmem:[#allocation6 + $0x78] sm:$0xff]  }
  0x30   :  { %v581_v31 = vld [vmem:[#allocation6 + $0x30] sm:$0xff]   ;;  %v584_v34 = vld [vmem:[#allocation6 + $0xf8] sm:$0xff]  }
  0x31   :  { %515 = vmatpush3.bf16.xpose.msra.mxu0 %v561_v11  ;;  %v582_v32 = vld [vmem:[#allocation6 + $0xb0] sm:$0xff]   ;;  %v585_v35 = vld [vmem:[#allocation6 + $0x38] sm:$0xff]  }
  0x32   :  { %533 = vmatpush3.bf16.xpose.msra.mxu1 %v562_v12  ;;  %516 = vmatprep.subr.bf16.mxu0 %v563_v13  ;;  %v586_v36 = vld [vmem:[#allocation6 + $0xb8] sm:$0xff]  }
  0x33   :  { %534 = vmatprep.subr.bf16.mxu1 %v564_v14  ;;  %v467_v46 = vld [vmem:[%s740_s1] ss:$0 sm:$0xff]  ;;  %s635_s1 = scalar_lea.vmem %s455_s12, 512 }
  0x34   :  { %p636_p2 = scmp.ne.s32.totalorder %s455_s12, %s635_s1  ;;  %p641_p4 = scmp.lt.s32.totalorder %s635_s1, %s635_s1 }
  0x36   :  { %p642_p5 = por %p641_p4, %p640_p3 }
  0x38   :  { %p643_p6 = pnand %p642_p5, %p636_p2 }
  0x39   :  { %517 = vmatpush3.bf16.xpose.msra.mxu0 %v565_v15 }
  0x3a   :  { %535 = vmatpush3.bf16.xpose.msra.mxu1 %v566_v16  ;;  %518 = vmatprep.subr.bf16.mxu0 %v567_v17 }
  0x3b   :  { %536 = vmatprep.subr.bf16.mxu1 %v568_v18 }
  0x41   :  { %519 = vmatpush3.bf16.xpose.msra.mxu0 %v569_v19 }
  0x42   :  { %537 = vmatpush3.bf16.xpose.msra.mxu1 %v570_v20  ;;  %520 = vmatprep.subr.bf16.mxu0 %v571_v21 }
  0x43   :  { %538 = vmatprep.subr.bf16.mxu1 %v572_v22 }
  0x49   :  { %521 = vmatpush3.bf16.xpose.msra.mxu0 %v573_v23 }
  0x4a   :  { %539 = vmatpush3.bf16.xpose.msra.mxu1 %v574_v24  ;;  %522 = vmatprep.subr.bf16.mxu0 %v575_v25 }
  0x4b   :  { %540 = vmatprep.subr.bf16.mxu1 %v576_v26 }
  0x51   :  { %523 = vmatpush3.bf16.xpose.msra.mxu0 %v577_v27 }
  0x52   :  { %541 = vmatpush3.bf16.xpose.msra.mxu1 %v578_v28  ;;  %524 = vmatprep.subr.bf16.mxu0 %v579_v29 }
  0x53   :  { %542 = vmatprep.subr.bf16.mxu1 %v580_v30 }
  0x59   :  { %525 = vmatpush3.bf16.xpose.msra.mxu0 %v581_v31 }
  0x5a   :  { %543 = vmatpush3.bf16.xpose.msra.mxu1 %v582_v32  ;;  %526 = vmatprep.subr.bf16.mxu0 %v583_v33 }
  0x5b   :  { %544 = vmatprep.subr.bf16.mxu1 %v584_v34 }
  0x61   :  { %527 = vmatpush3.bf16.xpose.msra.mxu0 %v585_v35 }
  0x62   :  { %545 = vmatpush3.bf16.xpose.msra.mxu1 %v586_v36 }
  0xb8   :  { %v55_v37 = vpop.xlane.xlu0 %54 }
  0xb9   :  { %v59_v38 = vmul.f32 0.0078125, %v55_v37 }
  0xbb   :  { %v61_v39 = vadd.f32 1e-06, %v59_v38 }
  0xbc   :  { %v57_v40 = vpop.xlane.xlu0 %56 }
  0xbd   :  { %587 = vrsqrt.f32 %v61_v39  ;;  %v60_v41 = vmul.f32 0.0078125, %v57_v40 }
  0xbf   :  { %v62_v42 = vadd.f32 1e-06, %v60_v41 }
  0xc1   :  { %589 = vrsqrt.f32 %v62_v42 }
  0xc7   :  { %v588_v43 = vpop.eup %587 }
  0xc8   :  { %v65_v44 = vmul.f32 %v588_v43, %v714_v1 }
  0xca   :  { %v74_v48 = vmul.f32 %v467_v46, %v65_v44 }
  0xcb   :  { %v590_v45 = vpop.eup %589 }
  0xcc   :  { %v66_v47 = vmul.f32 %v590_v45, %v716_v2 }
  0xce   :  { %v75_v49 = vmul.f32 %v467_v46, %v66_v47 }
  0xd0   :  { %v76_v50 = vpack.c.bf16 %v75_v49, %v74_v48 }
  0xd2   :  { %528 = vmatprep.mubr.bf16.mxu0 %v76_v50  ;;  %546 = vmatprep.mubr.bf16.mxu1 %v76_v50 }
  0xd3   :  { %529 = vmatmul.mubr.bf16.vlgmr.msra.gmra.mrb[0].mxu0 %v76_v50  ;;  %547 = vmatmul.mubr.bf16.vlgmr.msra.gmra.mrb[0].mxu1 %v76_v50 }
 0x1a6   :  { %v369_v51 = vpop.f32.mrb[0].mxu0  ;;  %v412_v52 = vpop.f32.mrb[0].mxu1 }
 0x1a7   :  { %v371_v53 = vpop.f32.mrb[1].mxu0  ;;  %v414_v54 = vpop.f32.mrb[1].mxu1 }
 0x1a8   :  { %v504_v55 = vpack.c.bf16 %v371_v53, %v369_v51  ;;  %v505_v56 = vpack.c.bf16 %v414_v54, %v412_v52  ;;  %v373_v57 = vpop.f32.mrb[2].mxu0  ;;  %v416_v58 = vpop.f32.mrb[2].mxu1 }
 0x1a9   :  { %v375_v59 = vpop.f32.mrb[3].mxu0  ;;  %v418_v60 = vpop.f32.mrb[3].mxu1 }
 0x1aa   :  { %445 = vst [vmem:[#allocation8] sm:$0xff] %v504_v55  ;;  %446 = vst [vmem:[#allocation8 + $0x8] sm:$0xff] %v505_v56  ;;  %v506_v61 = vpack.c.bf16 %v375_v59, %v373_v57  ;;  %v507_v62 = vpack.c.bf16 %v418_v60, %v416_v58 }
 0x1ac   :  { %447 = vst [vmem:[#allocation8 + $0x10] sm:$0xff] %v506_v61  ;;  %448 = vst [vmem:[#allocation8 + $0x18] sm:$0xff] %v507_v62 }
 0x1ad   :  { %646 = shalt.err (!%p643_p6)
}
 0x1ae   :  { %s647_s15 = scalar_lea.hbm %s742_s3, 512 }
 0x1af   :  { %p648_p7 = scmp.ne.s32.totalorder %s742_s3, %s647_s15  ;;  %p651_p8 = scmp.lt.u32.totalorder %s647_s15, %s742_s3 }
 0x1b1   :  { %p653_p9 = pnand %p651_p8, %p648_p7 }
 0x1b3   :  { %656 = shalt.err (!%p653_p9)
}
 0x1b4   :  { %s668_s20 = smov 256   ;;  %s669_s21 = smov 16  }
 0x1b5   :  { %460 = dma.vmem_to_hbm [thread:$0]  %s455_s12, 512, %s742_s3, [#allocation5], %s668_s20, %s668_s20, %s669_s21  }
 0x1b6   :  { %661 = dma.done.wait [#allocation5], 512  }
 0x1b7   :  { %662 = vsyncadd [#allocation5], 4294966784 }
 0x1b8   :  { %464 = vsyncpa [#allocation4], 1 }
 0x1b9   :  { %465 = vsyncpa [#allocation7], 1 }
 0x1ba   :  { %466 = vsyncpa [#allocation5], 1 }

</bundles_post_ra>
